<compile_context>
chip_gen: v7x
topology: tpu7x:2x2x1
jax: 0.10.0
libtpu: 0.0.40
codegen_flags: <defaults>
</compile_context>

<pallas_src>
import functools

import jax
import jax.numpy as jnp
from jax.experimental import pallas as pl
from jax.experimental.pallas import tpu as pltpu


# ----------------------------------------------------------------------------
# Kernel 1: per-row partial sums for NMSE (gridded: rows parallel, D reduce)
# ----------------------------------------------------------------------------
def nmse_partial_kernel(t_ref, s_ref, num_ref, s2_ref, t2_ref, *,
                        d_total, block_d, need_col_mask):
    """Accumulate per-row sum((s-t)^2), sum(s^2), sum(t^2) over feature blocks.

    Grid = (row_blocks ["parallel"], feature_blocks ["arbitrary" reduction]).
    Output blocks are keyed only on the row-block index, so they stay
    resident in VMEM across the feature axis and act as accumulators.
    """
    di = pl.program_id(1)

    @pl.when(di == 0)
    def _():
        num_ref[...] = jnp.zeros_like(num_ref)
        s2_ref[...] = jnp.zeros_like(s2_ref)
        t2_ref[...] = jnp.zeros_like(t2_ref)

    t = t_ref[...].astype(jnp.float32)
    s = s_ref[...].astype(jnp.float32)

    if need_col_mask:  # static: only compiled when D % block_d != 0
        col = di * block_d + jax.lax.broadcasted_iota(jnp.int32, t.shape, 1)
        valid = col < d_total
        t = jnp.where(valid, t, 0.0)
        s = jnp.where(valid, s, 0.0)

    diff = s - t
    num_ref[...] += jnp.sum(diff * diff, axis=1, keepdims=True)
    s2_ref[...] += jnp.sum(s * s, axis=1, keepdims=True)
    t2_ref[...] += jnp.sum(t * t, axis=1, keepdims=True)


def _pack_factor(batch, d):
    """Pick k so (B, D) -> (B*k, D//k) fills >= 8 sublanes for tiny batches."""
    if batch >= 8:
        return 1
    target = max(1, 8 // batch)
    for k in range(target, 0, -1):
        if d % k == 0:
            return k
    return 1


def _choose_tiles(rows, d, itemsize, max_block_bytes=2 * 1024 * 1024):
    """Block sizes: ~2 MiB per input block => ~8 MiB double-buffered total.

    Row block: full `rows` (if small) or a multiple of 8.
    Feature block: full `d` or a multiple of 128 (lane aligned).
    """
    max_elems = max(1, max_block_bytes // itemsize)
    tb = rows if rows <= 256 else 256
    td = min(d, max(128, max_elems // tb))
    if td < d:
        td = max(128, (td // 128) * 128)
    return tb, td


def nmse_layer_partials(t_layer, s_layer):
    """Per-row (num, ||s||^2, ||t||^2) for one layer pair; combine in JAX."""
    b = t_layer.shape[0]
    t2d = t_layer.reshape(b, -1)
    s2d = s_layer.reshape(b, -1)
    d_full = t2d.shape[1]

    # Sublane repacking for small batches (free row-major reshape).
    k = _pack_factor(b, d_full)
    rows, d = b * k, d_full // k
    t2d = t2d.reshape(rows, d)
    s2d = s2d.reshape(rows, d)

    itemsize = max(jnp.dtype(t2d.dtype).itemsize, jnp.dtype(s2d.dtype).itemsize)
    tb, td = _choose_tiles(rows, d, itemsize)
    grid = (pl.cdiv(rows, tb), pl.cdiv(d, td))
    need_col_mask = (d % td) != 0

    kern = functools.partial(nmse_partial_kernel, d_total=d, block_d=td,
                             need_col_mask=need_col_mask)

    in_spec = pl.BlockSpec((tb, td), lambda bi, di: (bi, di))
    out_spec = pl.BlockSpec((tb, 1), lambda bi, di: (bi, 0))
    out_shape = jax.ShapeDtypeStruct((rows, 1), jnp.float32)

    cost = pl.CostEstimate(
        flops=int(8 * rows * d),
        transcendentals=0,
        bytes_accessed=int(2 * rows * d * itemsize + 3 * rows * 4),
    )

    num_p, s2_p, t2_p = pl.pallas_call(
        kern,
        grid=grid,
        in_specs=[in_spec, in_spec],
        out_specs=(out_spec, out_spec, out_spec),
        out_shape=(out_shape, out_shape, out_shape),
        compiler_params=pltpu.CompilerParams(
            dimension_semantics=("parallel", "arbitrary"),
            vmem_limit_bytes=32 * 1024 * 1024,
        ),
        cost_estimate=cost,
    )(t2d, s2d)

    # Un-pack: combine the k sub-rows belonging to each original batch row.
    num = num_p.reshape(b, k).sum(axis=1)
    s2 = s2_p.reshape(b, k).sum(axis=1)
    t2 = t2_p.reshape(b, k).sum(axis=1)
    return num, s2, t2


# ----------------------------------------------------------------------------
# Kernel 2: fused KDLoss (soft-label CE + hard-label CE) on (B, num_classes)
# ----------------------------------------------------------------------------
def kd_ce_kernel(t_ref, s_ref, out_ref, *, alpha):
    """alpha * CE(student, softmax(teacher)) + (1-alpha) * CE(student, argmax(teacher))."""
    t = t_ref[...].astype(jnp.float32)
    s = s_ref[...].astype(jnp.float32)
    n_cls = t.shape[1]

    # log_softmax(student), shared by both CE terms.
    ls = s - jnp.max(s, axis=1, keepdims=True)
    ls = ls - jnp.log(jnp.sum(jnp.exp(ls), axis=1, keepdims=True))

    # softmax(teacher): single exp pass, reused for both max/normalization.
    tmax = jnp.max(t, axis=1, keepdims=True)
    et = jnp.exp(t - tmax)
    pt = et / jnp.sum(et, axis=1, keepdims=True)

    # Soft-target CE (probability targets, mean over batch).
    soft = jnp.mean(-jnp.sum(pt * ls, axis=1))

    # Hard-label CE: argmax with first-index tie-break (torch.argmax semantics).
    col = jax.lax.broadcasted_iota(jnp.int32, t.shape, 1)
    idx = jnp.min(jnp.where(t == tmax, col, n_cls), axis=1, keepdims=True)
    hard = jnp.mean(-jnp.sum(jnp.where(col == idx, ls, 0.0), axis=1))

    out_ref[0, 0] = alpha * soft + (1.0 - alpha) * hard


def kd_ce_loss(teacher_out, student_out, alpha):
    # Logits are (B, num_classes): tiny, one un-gridded block (both CE terms
    # fused into a single launch); gridding this would be launch-dominated.
    b, c = student_out.shape
    out = pl.pallas_call(
        functools.partial(kd_ce_kernel, alpha=float(alpha)),
        out_shape=jax.ShapeDtypeStruct((1, 1), jnp.float32),
        in_specs=[
            pl.BlockSpec(memory_space=pltpu.VMEM),
            pl.BlockSpec(memory_space=pltpu.VMEM),
        ],
        out_specs=pl.BlockSpec(memory_space=pltpu.SMEM),
        cost_estimate=pl.CostEstimate(
            flops=int(12 * b * c),
            transcendentals=int(2 * b * c),
            bytes_accessed=int(2 * b * c * 4 + 4),
        ),
    )(teacher_out, student_out)
    return out[0, 0]


# ----------------------------------------------------------------------------
# Top-level forward (matches SSIMAttentionAwareNMLoss.forward)
# ----------------------------------------------------------------------------
def ssim_attention_aware_nm_loss(outputs, llambda=0.99, alpha=0.9,
                                 stability_const=1e-8):
    """outputs = [(teacher_out, teacher_layers), (student_out, student_layers)]"""
    teacher_out, teacher_layers = outputs[0]
    student_out, student_layers = outputs[1]

    # TODO(synk): step()/lambda scheduling is training-loop state, not part of
    # the forward pass, so it is intentionally not translated.

    at_loss = jnp.float32(0.0)
    for t_layer, s_layer in zip(teacher_layers, student_layers):
        num, s2, t2 = nmse_layer_partials(t_layer, s_layer)
        nmse = jnp.mean(num / (s2 + t2 + jnp.float32(stability_const)))
        at_loss = at_loss + nmse

    ce_loss = kd_ce_loss(teacher_out, student_out, alpha)

    llam = jnp.float32(llambda)
    return (1.0 - llam) * at_loss + llam * ce_loss


# ----------------------------------------------------------------------------
# Pure-JAX reference (for correctness check)
# ----------------------------------------------------------------------------
def _reference(outputs, llambda=0.99, alpha=0.9, stability_const=1e-8):
    (t_out, t_layers), (s_out, s_layers) = outputs
    at = jnp.float32(0.0)
    for tl, sl in zip(t_layers, s_layers):
        t = tl.reshape(tl.shape[0], -1).astype(jnp.float32)
        s = sl.reshape(sl.shape[0], -1).astype(jnp.float32)
        num = jnp.sum((s - t) ** 2, axis=1)
        den = jnp.sum(s * s, axis=1) + jnp.sum(t * t, axis=1) + stability_const
        at = at + jnp.mean(num / den)
    ls = jax.nn.log_softmax(s_out.astype(jnp.float32), axis=1)
    pt = jax.nn.softmax(t_out.astype(jnp.float32), axis=1)
    soft = jnp.mean(-jnp.sum(pt * ls, axis=1))
    hard_idx = jnp.argmax(t_out, axis=1)
    hard = jnp.mean(-jnp.take_along_axis(ls, hard_idx[:, None], axis=1))
    ce = alpha * soft + (1.0 - alpha) * hard
    return (1.0 - llambda) * at + llambda * ce


# ----------------------------------------------------------------------------
# Demo / smoke test
# ----------------------------------------------------------------------------
if __name__ == "__main__":
    key = jax.random.PRNGKey(0)
    k1, k2, k3, k4, k5, k6 = jax.random.split(key, 6)

    B, C_cls = 2, 16
    # Intermediate layer feature maps (NCHW, as PyTorch would produce).
    teacher_layers = [
        jax.random.normal(k1, (B, 4, 16, 16), jnp.float32),
        jax.random.normal(k2, (B, 8, 8, 8), jnp.float32),
    ]
    student_layers = [
        jax.random.normal(k3, (B, 4, 16, 16), jnp.float32),
        jax.random.normal(k4, (B, 8, 8, 8), jnp.float32),
    ]
    teacher_out = jax.random.normal(k5, (B, C_cls), jnp.float32)
    student_out = jax.random.normal(k6, (B, C_cls), jnp.float32)

    outputs = [(teacher_out, teacher_layers), (student_out, student_layers)]

    loss = ssim_attention_aware_nm_loss(outputs, llambda=0.99, alpha=0.9)
    loss = jax.block_until_ready(loss)

    ref = jax.block_until_ready(_reference(outputs, llambda=0.99, alpha=0.9))

    assert loss.shape == () and jnp.isfinite(loss)
    assert abs(float(loss) - float(ref)) <= 1e-4 + 1e-4 * abs(float(ref)), (
        float(loss), float(ref))
    print("KERNEL_OK")
</pallas_src>

<mosaic_0001>
module attributes {stable_mosaic.version = 11 : i64} {
  func.func @nmse_partial_kernel(%arg0: i32, %arg1: i32, %arg2: memref<8x256xf32, #tpu.memory_space<vmem>>, %arg3: memref<8x256xf32, #tpu.memory_space<vmem>>, %arg4: memref<8x1xf32, #tpu.memory_space<vmem>>, %arg5: memref<8x1xf32, #tpu.memory_space<vmem>>, %arg6: memref<8x1xf32, #tpu.memory_space<vmem>>) attributes {dimension_semantics = [#tpu.dimension_semantics<parallel>, #tpu.dimension_semantics<arbitrary>], iteration_bounds = array<i64: 1, 1>, scalar_prefetch = 0 : i64, scratch_operands = 0 : i64, tpu.core_type = #tpu.core_type<tc>, window_params = [{transform_indices = @transform_0, window_bounds = array<i64: 8, 256>}, {transform_indices = @transform_1, window_bounds = array<i64: 8, 256>}, {transform_indices = @transform_2, window_bounds = array<i64: 8, 1>}, {transform_indices = @transform_3, window_bounds = array<i64: 8, 1>}, {transform_indices = @transform_4, window_bounds = array<i64: 8, 1>}]} {
    %c0_i32 = arith.constant 0 : i32
    %0 = arith.cmpi eq, %arg1, %c0_i32 : i32
    %1 = arith.extui %0 : i1 to i32
    %c0_i32_0 = arith.constant 0 : i32
    %2 = arith.cmpi ne, %1, %c0_i32_0 : i32
    scf.if %2 {
      %cst_18 = arith.constant 0.000000e+00 : f32
      %24 = vector.broadcast %cst_18 : f32 to vector<8x1xf32>
      %c0_19 = arith.constant 0 : index
      %c0_20 = arith.constant 0 : index
      %25 = vector.load %arg4[%c0_19, %c0_20] : memref<8x1xf32, #tpu.memory_space<vmem>>, vector<8x1xf32>
      tpu.vector_store %arg4[%c0_19, %c0_20], %24 {strides = array<i32>} : memref<8x1xf32, #tpu.memory_space<vmem>>, vector<8x1xf32>,
      %cst_21 = arith.constant 0.000000e+00 : f32
      %26 = vector.broadcast %cst_21 : f32 to vector<8x1xf32>
      %c0_22 = arith.constant 0 : index
      %c0_23 = arith.constant 0 : index
      %27 = vector.load %arg5[%c0_22, %c0_23] : memref<8x1xf32, #tpu.memory_space<vmem>>, vector<8x1xf32>
      tpu.vector_store %arg5[%c0_22, %c0_23], %26 {strides = array<i32>} : memref<8x1xf32, #tpu.memory_space<vmem>>, vector<8x1xf32>,
      %cst_24 = arith.constant 0.000000e+00 : f32
      %28 = vector.broadcast %cst_24 : f32 to vector<8x1xf32>
      %c0_25 = arith.constant 0 : index
      %c0_26 = arith.constant 0 : index
      %29 = vector.load %arg6[%c0_25, %c0_26] : memref<8x1xf32, #tpu.memory_space<vmem>>, vector<8x1xf32>
      tpu.vector_store %arg6[%c0_25, %c0_26], %28 {strides = array<i32>} : memref<8x1xf32, #tpu.memory_space<vmem>>, vector<8x1xf32>,
    } else {
    }
    %c0 = arith.constant 0 : index
    %c0_1 = arith.constant 0 : index
    %3 = vector.load %arg2[%c0, %c0_1] : memref<8x256xf32, #tpu.memory_space<vmem>>, vector<8x256xf32>
    %c0_2 = arith.constant 0 : index
    %c0_3 = arith.constant 0 : index
    %4 = vector.load %arg3[%c0_2, %c0_3] : memref<8x256xf32, #tpu.memory_space<vmem>>, vector<8x256xf32>
    %5 = arith.subf %4, %3 : vector<8x256xf32>
    %c0_4 = arith.constant 0 : index
    %c0_5 = arith.constant 0 : index
    %6 = vector.load %arg4[%c0_4, %c0_5] : memref<8x1xf32, #tpu.memory_space<vmem>>, vector<8x1xf32>
    %7 = arith.mulf %5, %5 : vector<8x256xf32>
    %cst = arith.constant dense<0.000000e+00> : vector<8xf32>
    %8 = vector.multi_reduction <add>, %7, %cst [1] : vector<8x256xf32> to vector<8xf32>
    %9 = vector.shape_cast %8 : vector<8xf32> to vector<8x1xf32>
    %10 = arith.addf %6, %9 : vector<8x1xf32>
    %c0_6 = arith.constant 0 : index
    %c0_7 = arith.constant 0 : index
    %11 = vector.load %arg4[%c0_6, %c0_7] : memref<8x1xf32, #tpu.memory_space<vmem>>, vector<8x1xf32>
    tpu.vector_store %arg4[%c0_6, %c0_7], %10 {strides = array<i32>} : memref<8x1xf32, #tpu.memory_space<vmem>>, vector<8x1xf32>,
    %c0_8 = arith.constant 0 : index
    %c0_9 = arith.constant 0 : index
    %12 = vector.load %arg5[%c0_8, %c0_9] : memref<8x1xf32, #tpu.memory_space<vmem>>, vector<8x1xf32>
    %13 = arith.mulf %4, %4 : vector<8x256xf32>
    %cst_10 = arith.constant dense<0.000000e+00> : vector<8xf32>
    %14 = vector.multi_reduction <add>, %13, %cst_10 [1] : vector<8x256xf32> to vector<8xf32>
    %15 = vector.shape_cast %14 : vector<8xf32> to vector<8x1xf32>
    %16 = arith.addf %12, %15 : vector<8x1xf32>
    %c0_11 = arith.constant 0 : index
    %c0_12 = arith.constant 0 : index
    %17 = vector.load %arg5[%c0_11, %c0_12] : memref<8x1xf32, #tpu.memory_space<vmem>>, vector<8x1xf32>
    tpu.vector_store %arg5[%c0_11, %c0_12], %16 {strides = array<i32>} : memref<8x1xf32, #tpu.memory_space<vmem>>, vector<8x1xf32>,
    %c0_13 = arith.constant 0 : index
    %c0_14 = arith.constant 0 : index
    %18 = vector.load %arg6[%c0_13, %c0_14] : memref<8x1xf32, #tpu.memory_space<vmem>>, vector<8x1xf32>
    %19 = arith.mulf %3, %3 : vector<8x256xf32>
    %cst_15 = arith.constant dense<0.000000e+00> : vector<8xf32>
    %20 = vector.multi_reduction <add>, %19, %cst_15 [1] : vector<8x256xf32> to vector<8xf32>
    %21 = vector.shape_cast %20 : vector<8xf32> to vector<8x1xf32>
    %22 = arith.addf %18, %21 : vector<8x1xf32>
    %c0_16 = arith.constant 0 : index
    %c0_17 = arith.constant 0 : index
    %23 = vector.load %arg6[%c0_16, %c0_17] : memref<8x1xf32, #tpu.memory_space<vmem>>, vector<8x1xf32>
    tpu.vector_store %arg6[%c0_16, %c0_17], %22 {strides = array<i32>} : memref<8x1xf32, #tpu.memory_space<vmem>>, vector<8x1xf32>,
    return
  }
  func.func @transform_0(%arg0: i32, %arg1: i32) -> (i32, i32) {
    %c0_i32 = arith.constant 0 : i32
    return %arg0, %arg1 : i32, i32
  }
  func.func @transform_1(%arg0: i32, %arg1: i32) -> (i32, i32) {
    %c0_i32 = arith.constant 0 : i32
    return %arg0, %arg1 : i32, i32
  }
  func.func @transform_2(%arg0: i32, %arg1: i32) -> (i32, i32) {
    %c0_i32 = arith.constant 0 : i32
    %c0_i32_0 = arith.constant 0 : i32
    return %arg0, %c0_i32 : i32, i32
  }
  func.func @transform_3(%arg0: i32, %arg1: i32) -> (i32, i32) {
    %c0_i32 = arith.constant 0 : i32
    %c0_i32_0 = arith.constant 0 : i32
    return %arg0, %c0_i32 : i32, i32
  }
  func.func @transform_4(%arg0: i32, %arg1: i32) -> (i32, i32) {
    %c0_i32 = arith.constant 0 : i32
    %c0_i32_0 = arith.constant 0 : i32
    return %arg0, %c0_i32 : i32, i32
  }
}

</mosaic_0001>

<bundles_post_ra>
// kernel: tpu_custom_call.1
= control target key start
LH: loop header
LB: loop body
LE: loop exit
PB: predicated region body
PF: predicated region fallthrough
CT: control target
= control target key end

     0   :  { %10 = vsyncpa [#allocation3], 0  ;;  %s227_s0 = inlined_call_operand.hbm [shape: f32[8,256], index: 0, kind: input, shape index: {}]   ;;  %s228_s1 = inlined_call_operand.hbm [shape: f32[8,256], index: 1, kind: input, shape index: {}]   ;;  %s229_s2 = inlined_call_operand.vmem [shape: f32[8,1], index: 2, kind: output, shape index: {0}]   ;;  %s230_s3 = inlined_call_operand.vmem [shape: f32[8,1], index: 3, kind: output, shape index: {1}]   ;;  %s231_s4 = inlined_call_operand.vmem [shape: f32[8,1], index: 4, kind: output, shape index: {2}]  }
   0x1   :  { %11 = vsyncpa [#allocation5], 0  ;;  %s142_s15 = smov [#allocation2]   ;;  %s143_s17 = smov [#allocation4]  }
   0x2   :  { %s18_s16 = sshll.u32 %s142_s15, 4  ;;  %s28_s18 = sshll.u32 %s143_s17, 4  ;;  %s19_s16 = int_to_ptr.vmem [resolvable:$true] %s18_s16  ;;  %s29_s18 = int_to_ptr.vmem [resolvable:$true] %s28_s18 }
   0x3   :  { %s94_s21 = scalar_lea.hbm %s227_s0, 256 }
   0x4   :  { %p95_p0 = scmp.ne.s32.totalorder %s227_s0, %s94_s21  ;;  %p98_p1 = scmp.lt.u32.totalorder %s94_s21, %s227_s0 }
   0x6   :  { %p100_p2 = pnand %p98_p1, %p95_p0 }
   0x8   :  { %103 = shalt.err (!%p100_p2)
}
   0x9   :  { %s104_s26 = scalar_lea.vmem %s19_s16, 256  ;;  %p109_p4 = scmp.lt.s32.totalorder %s19_s16, %s19_s16 }
   0xa   :  { %p105_p3 = scmp.ne.s32.totalorder %s19_s16, %s104_s26  ;;  %p110_p5 = scmp.lt.s32.totalorder %s104_s26, %s104_s26 }
   0xc   :  { %p111_p6 = por %p110_p5, %p109_p4 }
   0xe   :  { %p112_p7 = pnand %p111_p6, %p105_p3 }
  0x10   :  { %115 = shalt.err (!%p112_p7)
}
  0x11   :  { %21 = dma.hbm_to_vmem [thread:$0]  %s227_s0, 256, %s19_s16, [#allocation3]  }
  0x12   :  { %s116_s5 = scalar_lea.hbm %s228_s1, 256 }
  0x13   :  { %p117_p8 = scmp.ne.s32.totalorder %s228_s1, %s116_s5  ;;  %p120_p9 = scmp.lt.u32.totalorder %s116_s5, %s228_s1 }
  0x15   :  { %p122_p10 = pnand %p120_p9, %p117_p8 }
  0x17   :  { %125 = shalt.err (!%p122_p10)
}
  0x18   :  { %s126_s10 = scalar_lea.vmem %s29_s18, 256  ;;  %p131_p12 = scmp.lt.s32.totalorder %s29_s18, %s29_s18 }
  0x19   :  { %p127_p11 = scmp.ne.s32.totalorder %s29_s18, %s126_s10  ;;  %p132_p13 = scmp.lt.s32.totalorder %s126_s10, %s126_s10 }
  0x1b   :  { %p133_p0 = por %p132_p13, %p131_p12 }
  0x1d   :  { %p134_p1 = pnand %p133_p0, %p127_p11 }
  0x1f   :  { %137 = shalt.err (!%p134_p1)
}
  0x20   :  { %31 = dma.hbm_to_vmem [thread:$0]  %s228_s1, 256, %s29_s18, [#allocation5]  }
  0x21   :  { %138 = dma.done.wait [#allocation3], 256  }
  0x22   :  { %139 = vsyncadd [#allocation3], 4294967040 }
  0x23   :  { %140 = dma.done.wait [#allocation5], 256  }
  0x24   :  { %141 = vsyncadd [#allocation5], 4294967040  ;;  %vm42_vm0 = vcmask 7168   ;;  %v144_v0 = vmov 0.0   ;;  %v46_v1 = vld [vmem:[#allocation2] sm:$0xff]  ;;  %v47_v2 = vld [vmem:[#allocation2 + $0x8] sm:$0xff] }
  0x25   :  { %43 = vst.msk [vmem:[%s229_s2] sm:$0xff] %vm42_vm0, %v144_v0  ;;  %44 = vst.msk [vmem:[%s230_s3] sm:$0xff] %vm42_vm0, %v144_v0  ;;  %v48_v3 = vld [vmem:[#allocation4] sm:$0xff]  ;;  %v49_v4 = vld [vmem:[#allocation4 + $0x8] sm:$0xff]  ;;  %v70_v6 = vmul.f32 %v46_v1, %v46_v1  ;;  %v71_v7 = vmul.f32 %v47_v2, %v47_v2 }
  0x26   :  { %45 = vst.msk [vmem:[%s231_s4] sm:$0xff] %vm42_vm0, %v144_v0  ;;  %v50_v5 = vsub.f32 %v48_v3, %v46_v1  ;;  %v51_v8 = vsub.f32 %v49_v4, %v47_v2  ;;  %v62_v12 = vmul.f32 %v48_v3, %v48_v3  ;;  %v63_v13 = vmul.f32 %v49_v4, %v49_v4 }
  0x27   :  { %v72_v10 = vadd.f32 %v71_v7, %v70_v6 }
  0x28   :  { %v53_v9 = vmul.f32 %v50_v5, %v50_v5  ;;  %v54_v11 = vmul.f32 %v51_v8, %v51_v8  ;;  %v64_v15 = vadd.f32 %v63_v13, %v62_v12 }
  0x29   :  { %73 = vadd.xlane.f32.xlu1 %v72_v10 }
  0x2a   :  { %v55_v14 = vadd.f32 %v54_v11, %v53_v9 }
  0x2c   :  { %56 = vadd.xlane.f32.xlu0 %v55_v14  ;;  %v52_v18 = vld [vmem:[%s229_s2] sm:$0xff] }
  0x2d   :  { %v69_v16 = vld [vmem:[%s231_s4] sm:$0xff] }
  0x2e   :  { %v61_v22 = vld [vmem:[%s230_s3] sm:$0xff] }
  0x30   :  { %65 = vadd.xlane.f32.xlu0 %v64_v15 }
  0xb6   :  { %v74_v17 = vpop.xlane.xlu1 %73 }
  0xb7   :  { %v75_v19 = vadd.f32 %v74_v17, %v69_v16 }
  0xb9   :  { %v57_v20 = vpop.xlane.xlu0 %56  ;;  %76 = vst.msk [vmem:[%s231_s4] sm:$0xff] %vm42_vm0, %v75_v19 }
  0xba   :  { %v58_v21 = vadd.f32 %v57_v20, %v52_v18 }
  0xbc   :  { %60 = vst.msk [vmem:[%s229_s2] sm:$0xff] %vm42_vm0, %v58_v21 }
  0xbd   :  { %v66_v23 = vpop.xlane.xlu0 %65 }
  0xbe   :  { %v67_v24 = vadd.f32 %v66_v23, %v61_v22 }
  0xc0   :  { %68 = vst.msk [vmem:[%s230_s3] sm:$0xff] %vm42_vm0, %v67_v24 }
  0xc1   :  { %89 = vsyncpa [#allocation3], 1 }
  0xc2   :  { %90 = vsyncpa [#allocation5], 1 }

</bundles_post_ra>
